<compile_context>
chip_gen: v7x
topology: tpu7x:2x2x1
jax: 0.10.0
libtpu: 0.0.40
codegen_flags: <defaults>
</compile_context>

<pallas_src>
import jax
import jax.numpy as jnp
from jax.experimental import pallas as pl
from jax.experimental.pallas import tpu as pltpu


def _round_up(x, m):
    return (x + m - 1) // m * m


def regressor_kernel(logits_ref, feats_ref,
                     w1_ref, b1_ref,
                     w2a_ref, w2b_ref, b2_ref,
                     w3_ref, b3_ref,
                     out_ref):
    # fc1: stream f32 logits, cast to bf16 in-register for the MXU; f32 acc,
    # bias + tanh stay in f32 on the VPU/EUP.  Dropout(0.2) is identity in eval.
    logits_bf = logits_ref[...].astype(jnp.bfloat16)            # (TB, 768)
    h1 = jnp.tanh(
        jnp.dot(logits_bf, w1_ref[...], preferred_element_type=jnp.float32)
        + b1_ref[...]
    )                                                            # (TB, 512) f32

    # fc2: concat([h1, feats]) @ W2 split into two MXU dots; the feats term is a
    # tiny K=8 (zero-padded from 5) dot instead of a VPU broadcast-FMA loop.
    acc = jnp.dot(h1.astype(jnp.bfloat16), w2a_ref[...],
                  preferred_element_type=jnp.float32)
    acc = acc + jnp.dot(feats_ref[...].astype(jnp.bfloat16), w2b_ref[...],
                        preferred_element_type=jnp.float32)
    h2 = jnp.tanh(acc + b2_ref[...])                             # (TB, 256) f32

    # Final Linear(256 -> 1) as a VPU multiply + XLU lane-reduce; output is a
    # true (TB, 1) column (no zero-padded writeback).
    out_ref[...] = (jnp.sum(h2 * w3_ref[...], axis=-1, keepdims=True)
                    + b3_ref[...])


def roberta_regressor_head(logits, feats, kparams, *, tb=None):
    """logits: (B, 768) f32, feats: (B, 5) f32  ->  (B, 1) f32."""
    B = logits.shape[0]
    (w1, b1, w2a, w2b8, b2, w3row, b3) = kparams

    if tb is None:
        # Aim for >= 2 grid steps (v7x megacore sharding), multiple-of-8
        # sublanes (f32 input tiles), capped at 2048 rows so the
        # double-buffered f32 logits tile (~12 MiB) + ~1 MiB of resident
        # weights fit scoped VMEM on every generation.
        tb = max(8, min(2048, _round_up(pl.cdiv(B, 2), 8)))
    Bp = _round_up(B, tb)

    logits = logits.astype(jnp.float32)   # streamed f32; cast to bf16 in-kernel
    feats = feats.astype(jnp.float32)
    # Zero-pad feats to 8 lanes (K=8 MXU dot; rows 5..7 of w2b are zero) and
    # pad the batch remainder.
    # TODO(synk): a masked last tile (pl.when + pl.ds) would avoid the batch
    # pad pass; it is negligible at these tile sizes.
    feats = jnp.pad(feats, ((0, Bp - B), (0, 8 - feats.shape[1])))
    if Bp != B:
        logits = jnp.pad(logits, ((0, Bp - B), (0, 0)))

    const = lambda i: (0, 0)
    out = pl.pallas_call(
        regressor_kernel,
        out_shape=jax.ShapeDtypeStruct((Bp, 1), jnp.float32),
        grid=(Bp // tb,),
        in_specs=[
            pl.BlockSpec((tb, 768), lambda i: (i, 0)),   # logits (streamed)
            pl.BlockSpec((tb, 8), lambda i: (i, 0)),     # feats  (streamed)
            pl.BlockSpec((768, 512), const),             # w1  (VMEM-resident)
            pl.BlockSpec((1, 512), const),               # b1
            pl.BlockSpec((512, 256), const),             # w2a
            pl.BlockSpec((8, 256), const),               # w2b (K padded to 8)
            pl.BlockSpec((1, 256), const),               # b2
            pl.BlockSpec((1, 256), const),               # w3 row (f32)
            pl.BlockSpec((1, 1), const),                 # b3 scalar
        ],
        out_specs=pl.BlockSpec((tb, 1), lambda i: (i, 0)),
        compiler_params=pltpu.CompilerParams(
            dimension_semantics=("parallel",),
            vmem_limit_bytes=32 * 1024 * 1024),
    )(logits, feats, w1, b1, w2a, w2b8, b2, w3row, b3)

    return out[:B]


def init_params(key):
    """f32 'torch-like' parameters for the head."""
    k1, k2, k3, k4, k5, k6 = jax.random.split(key, 6)
    scale = 0.02
    w1 = scale * jax.random.normal(k1, (768, 512), jnp.float32)
    b1 = scale * jax.random.normal(k2, (1, 512), jnp.float32)
    w2 = scale * jax.random.normal(k3, (512 + 5, 256), jnp.float32)
    b2 = scale * jax.random.normal(k4, (1, 256), jnp.float32)
    w3 = scale * jax.random.normal(k5, (256, 1), jnp.float32)
    b3 = scale * jax.random.normal(k6, (1, 1), jnp.float32)
    return (w1, b1, w2, b2, w3, b3)


def prepare_kernel_params(params):
    """Convert f32 params to the kernel layout: bf16 MXU weights, split W2
    (K padded to 8 for the feats dot), f32 row vector for the final Linear."""
    (w1, b1, w2, b2, w3, b3) = params
    w2a, w2b = w2[:512], w2[512:]                 # (512,256), (5,256)
    w2b8 = jnp.pad(w2b, ((0, 3), (0, 0)))         # zero rows -> (8,256)
    return (w1.astype(jnp.bfloat16),
            b1.astype(jnp.float32),
            w2a.astype(jnp.bfloat16),
            w2b8.astype(jnp.bfloat16),
            b2.astype(jnp.float32),
            w3.T.astype(jnp.float32),             # (1, 256) row
            b3.astype(jnp.float32))               # (1, 1)


def reference(logits, feats, params):
    (w1, b1, w2, b2, w3, b3) = params
    h1 = jnp.tanh(logits @ w1 + b1)
    x = jnp.concatenate([h1, feats], axis=1)
    h2 = jnp.tanh(x @ w2 + b2)
    return h2 @ w3 + b3


if __name__ == "__main__":
    B = 8
    key = jax.random.PRNGKey(0)
    k_params, k_logits, k_feats = jax.random.split(key, 3)

    params_f32 = init_params(k_params)
    kparams = prepare_kernel_params(params_f32)

    # Stand-in for transformer(...).logits  -> (B, 768)
    logits = jax.random.normal(k_logits, (B, 768), jnp.float32)

    # gender, education, race, age, income: each (B, 1); concatenated to (B, 5)
    feats = jax.random.normal(k_feats, (B, 5), jnp.float32)

    out = roberta_regressor_head(logits, feats, kparams)
    out = jax.block_until_ready(out)

    ref = reference(logits, feats, params_f32)
    assert out.shape == (B, 1)
    # bf16 MXU inputs -> loosen the f32 tolerance accordingly.
    assert jnp.allclose(out, ref, atol=2e-2, rtol=2e-2), "mismatch vs reference"

    print("KERNEL_OK")
</pallas_src>

<mosaic_0001>
module attributes {stable_mosaic.version = 11 : i64} {
  func.func @regressor_kernel(%arg0: i32, %arg1: memref<8x768xf32, #tpu.memory_space<vmem>>, %arg2: memref<8x8xf32, #tpu.memory_space<vmem>>, %arg3: memref<768x512xbf16, #tpu.memory_space<vmem>>, %arg4: memref<1x512xf32, #tpu.memory_space<vmem>>, %arg5: memref<512x256xbf16, #tpu.memory_space<vmem>>, %arg6: memref<8x256xbf16, #tpu.memory_space<vmem>>, %arg7: memref<1x256xf32, #tpu.memory_space<vmem>>, %arg8: memref<1x256xf32, #tpu.memory_space<vmem>>, %arg9: memref<1x1xf32, #tpu.memory_space<vmem>>, %arg10: memref<8x1xf32, #tpu.memory_space<vmem>>) attributes {dimension_semantics = [#tpu.dimension_semantics<parallel>], iteration_bounds = array<i64: 1>, scalar_prefetch = 0 : i64, scratch_operands = 0 : i64, tpu.core_type = #tpu.core_type<tc>, window_params = [{transform_indices = @transform_0, window_bounds = array<i64: 8, 768>}, {transform_indices = @transform_1, window_bounds = array<i64: 8, 8>}, {pipeline_mode = #tpu.pipeline_mode<synchronous>, transform_indices = @transform_2, window_bounds = array<i64: 768, 512>}, {pipeline_mode = #tpu.pipeline_mode<synchronous>, transform_indices = @transform_3, window_bounds = array<i64: 1, 512>}, {pipeline_mode = #tpu.pipeline_mode<synchronous>, transform_indices = @transform_4, window_bounds = array<i64: 512, 256>}, {pipeline_mode = #tpu.pipeline_mode<synchronous>, transform_indices = @transform_5, window_bounds = array<i64: 8, 256>}, {pipeline_mode = #tpu.pipeline_mode<synchronous>, transform_indices = @transform_6, window_bounds = array<i64: 1, 256>}, {pipeline_mode = #tpu.pipeline_mode<synchronous>, transform_indices = @transform_7, window_bounds = array<i64: 1, 256>}, {pipeline_mode = #tpu.pipeline_mode<synchronous>, transform_indices = @transform_8, window_bounds = array<i64: 1, 1>}, {transform_indices = @transform_9, window_bounds = array<i64: 8, 1>}]} {
    %c0 = arith.constant 0 : index
    %c0_0 = arith.constant 0 : index
    %0 = vector.load %arg1[%c0, %c0_0] : memref<8x768xf32, #tpu.memory_space<vmem>>, vector<8x768xf32>
    %1 = arith.truncf %0 : vector<8x768xf32> to vector<8x768xbf16>
    %c0_1 = arith.constant 0 : index
    %c0_2 = arith.constant 0 : index
    %2 = vector.load %arg3[%c0_1, %c0_2] : memref<768x512xbf16, #tpu.memory_space<vmem>>, vector<768x512xbf16>
    %cst = arith.constant dense<0.000000e+00> : vector<8x512xf32>
    %3 = tpu.matmul %1, %2, %cst {dimension_numbers = #tpu.dot_dimension_numbers<[1], [0], [0], [1], [0, 0, 1, 1], [], []>} : vector<8x768xbf16>, vector<768x512xbf16>, vector<8x512xf32> -> vector<8x512xf32>
    %c0_3 = arith.constant 0 : index
    %c0_4 = arith.constant 0 : index
    %4 = vector.load %arg4[%c0_3, %c0_4] : memref<1x512xf32, #tpu.memory_space<vmem>>, vector<1x512xf32>
    %5 = vector.broadcast %4 : vector<1x512xf32> to vector<8x512xf32>
    %6 = arith.addf %3, %5 : vector<8x512xf32>
    %7 = math.tanh %6 : vector<8x512xf32>
    %8 = arith.truncf %7 : vector<8x512xf32> to vector<8x512xbf16>
    %c0_5 = arith.constant 0 : index
    %c0_6 = arith.constant 0 : index
    %9 = vector.load %arg5[%c0_5, %c0_6] : memref<512x256xbf16, #tpu.memory_space<vmem>>, vector<512x256xbf16>
    %cst_7 = arith.constant dense<0.000000e+00> : vector<8x256xf32>
    %10 = tpu.matmul %8, %9, %cst_7 {dimension_numbers = #tpu.dot_dimension_numbers<[1], [0], [0], [1], [0, 0, 1, 1], [], []>} : vector<8x512xbf16>, vector<512x256xbf16>, vector<8x256xf32> -> vector<8x256xf32>
    %c0_8 = arith.constant 0 : index
    %c0_9 = arith.constant 0 : index
    %11 = vector.load %arg2[%c0_8, %c0_9] : memref<8x8xf32, #tpu.memory_space<vmem>>, vector<8x8xf32>
    %12 = arith.truncf %11 : vector<8x8xf32> to vector<8x8xbf16>
    %c0_10 = arith.constant 0 : index
    %c0_11 = arith.constant 0 : index
    %13 = vector.load %arg6[%c0_10, %c0_11] : memref<8x256xbf16, #tpu.memory_space<vmem>>, vector<8x256xbf16>
    %cst_12 = arith.constant dense<0.000000e+00> : vector<8x256xf32>
    %14 = tpu.matmul %12, %13, %cst_12 {dimension_numbers = #tpu.dot_dimension_numbers<[1], [0], [0], [1], [0, 0, 1, 1], [], []>} : vector<8x8xbf16>, vector<8x256xbf16>, vector<8x256xf32> -> vector<8x256xf32>
    %15 = arith.addf %10, %14 : vector<8x256xf32>
    %c0_13 = arith.constant 0 : index
    %c0_14 = arith.constant 0 : index
    %16 = vector.load %arg7[%c0_13, %c0_14] : memref<1x256xf32, #tpu.memory_space<vmem>>, vector<1x256xf32>
    %17 = vector.broadcast %16 : vector<1x256xf32> to vector<8x256xf32>
    %18 = arith.addf %15, %17 : vector<8x256xf32>
    %19 = math.tanh %18 : vector<8x256xf32>
    %c0_15 = arith.constant 0 : index
    %c0_16 = arith.constant 0 : index
    %20 = vector.load %arg8[%c0_15, %c0_16] : memref<1x256xf32, #tpu.memory_space<vmem>>, vector<1x256xf32>
    %21 = vector.broadcast %20 : vector<1x256xf32> to vector<8x256xf32>
    %22 = arith.mulf %19, %21 : vector<8x256xf32>
    %cst_17 = arith.constant dense<0.000000e+00> : vector<8xf32>
    %23 = vector.multi_reduction <add>, %22, %cst_17 [1] : vector<8x256xf32> to vector<8xf32>
    %24 = vector.shape_cast %23 : vector<8xf32> to vector<8x1xf32>
    %c0_18 = arith.constant 0 : index
    %c0_19 = arith.constant 0 : index
    %25 = vector.load %arg9[%c0_18, %c0_19] : memref<1x1xf32, #tpu.memory_space<vmem>>, vector<1x1xf32>
    %26 = vector.broadcast %25 : vector<1x1xf32> to vector<8x1xf32>
    %27 = arith.addf %24, %26 : vector<8x1xf32>
    %c0_20 = arith.constant 0 : index
    %c0_21 = arith.constant 0 : index
    %28 = vector.load %arg10[%c0_20, %c0_21] : memref<8x1xf32, #tpu.memory_space<vmem>>, vector<8x1xf32>
    tpu.vector_store %arg10[%c0_20, %c0_21], %27 {strides = array<i32>} : memref<8x1xf32, #tpu.memory_space<vmem>>, vector<8x1xf32>,
    return
  }
  func.func @transform_0(%arg0: i32) -> (i32, i32) {
    %c0_i32 = arith.constant 0 : i32
    %c0_i32_0 = arith.constant 0 : i32
    return %arg0, %c0_i32 : i32, i32
  }
  func.func @transform_1(%arg0: i32) -> (i32, i32) {
    %c0_i32 = arith.constant 0 : i32
    %c0_i32_0 = arith.constant 0 : i32
    return %arg0, %c0_i32 : i32, i32
  }
  func.func @transform_2(%arg0: i32) -> (i32, i32) {
    %c0_i32 = arith.constant 0 : i32
    %c0_i32_0 = arith.constant 0 : i32
    %c0_i32_1 = arith.constant 0 : i32
    return %c0_i32, %c0_i32_0 : i32, i32
  }
  func.func @transform_3(%arg0: i32) -> (i32, i32) {
    %c0_i32 = arith.constant 0 : i32
    %c0_i32_0 = arith.constant 0 : i32
    %c0_i32_1 = arith.constant 0 : i32
    return %c0_i32, %c0_i32_0 : i32, i32
  }
  func.func @transform_4(%arg0: i32) -> (i32, i32) {
    %c0_i32 = arith.constant 0 : i32
    %c0_i32_0 = arith.constant 0 : i32
    %c0_i32_1 = arith.constant 0 : i32
    return %c0_i32, %c0_i32_0 : i32, i32
  }
  func.func @transform_5(%arg0: i32) -> (i32, i32) {
    %c0_i32 = arith.constant 0 : i32
    %c0_i32_0 = arith.constant 0 : i32
    %c0_i32_1 = arith.constant 0 : i32
    return %c0_i32, %c0_i32_0 : i32, i32
  }
  func.func @transform_6(%arg0: i32) -> (i32, i32) {
    %c0_i32 = arith.constant 0 : i32
    %c0_i32_0 = arith.constant 0 : i32
    %c0_i32_1 = arith.constant 0 : i32
    return %c0_i32, %c0_i32_0 : i32, i32
  }
  func.func @transform_7(%arg0: i32) -> (i32, i32) {
    %c0_i32 = arith.constant 0 : i32
    %c0_i32_0 = arith.constant 0 : i32
    %c0_i32_1 = arith.constant 0 : i32
    return %c0_i32, %c0_i32_0 : i32, i32
  }
  func.func @transform_8(%arg0: i32) -> (i32, i32) {
    %c0_i32 = arith.constant 0 : i32
    %c0_i32_0 = arith.constant 0 : i32
    %c0_i32_1 = arith.constant 0 : i32
    return %c0_i32, %c0_i32_0 : i32, i32
  }
  func.func @transform_9(%arg0: i32) -> (i32, i32) {
    %c0_i32 = arith.constant 0 : i32
    %c0_i32_0 = arith.constant 0 : i32
    return %arg0, %c0_i32 : i32, i32
  }
}

</mosaic_0001>

<bundles_post_ra>
// kernel: tpu_custom_call.1
= control target key start
LH: loop header
LB: loop body
LE: loop exit
PB: predicated region body
PF: predicated region fallthrough
CT: control target
= control target key end

     0   :  { %s3019_s0 = inlined_call_operand.hbm [shape: f32[8,768], index: 0, kind: input, shape index: {}]   ;;  %s3020_s1 = inlined_call_operand.hbm [shape: f32[8,8], index: 1, kind: input, shape index: {}]   ;;  %s3021_s2 = inlined_call_operand.hbm [shape: bf16[768,512], index: 2, kind: input, shape index: {}]   ;;  %s3022_s3 = inlined_call_operand.vmem [shape: f32[1,512], index: 3, kind: input, shape index: {}]   ;;  %s3023_s4 = inlined_call_operand.hbm [shape: bf16[512,256], index: 4, kind: input, shape index: {}]   ;;  %s3024_s5 = inlined_call_operand.vmem [shape: bf16[8,256], index: 5, kind: input, shape index: {}]   ;;  %s3025_s6 = inlined_call_operand.vmem [shape: f32[1,256], index: 6, kind: input, shape index: {}]   ;;  %s3026_s7 = inlined_call_operand.vmem [shape: f32[1,256], index: 7, kind: input, shape index: {}]   ;;  %s3027_s8 = inlined_call_operand.<no memory space> [shape: f32[1,1], index: 8, kind: input, shape index: {}]   ;;  %s3028_s9 = inlined_call_operand.vmem [shape: f32[8,1], index: 9, kind: output, shape index: {}]  }
   0x1   :  { %v14_v0 = vstv %s3027_s8 }
   0x2   :  { %15 = vst [vmem:[#allocation2] sm:$0x1] %v14_v0 }
   0x3   :  { %16 = vsyncpa [#allocation4], 0 }
   0x4   :  { %17 = vsyncpa [#allocation6], 0 }
   0x5   :  { %18 = vsyncpa [#allocation9], 0  ;;  %s2884_s11 = smov [#allocation5]   ;;  %s2885_s13 = smov [#allocation3]  }
   0x6   :  { %s35_s12 = sshll.u32 %s2884_s11, 4  ;;  %s25_s14 = sshll.u32 %s2885_s13, 4  ;;  %s36_s12 = int_to_ptr.vmem [resolvable:$true] %s35_s12  ;;  %s26_s14 = int_to_ptr.vmem [resolvable:$true] %s25_s14 }
   0x7   :  { %s2790_s17 = scalar_lea.hbm %s3020_s1, 128 }
   0x8   :  { %p2791_p0 = scmp.ne.s32.totalorder %s3020_s1, %s2790_s17  ;;  %p2794_p1 = scmp.lt.u32.totalorder %s2790_s17, %s3020_s1 }
   0xa   :  { %p2796_p2 = pnand %p2794_p1, %p2791_p0 }
   0xc   :  { %2799 = shalt.err (!%p2796_p2)
}
   0xd   :  { %s2800_s21 = scalar_lea.vmem %s36_s12, 128  ;;  %p2805_p4 = scmp.lt.s32.totalorder %s36_s12, %s36_s12 }
   0xe   :  { %p2801_p3 = scmp.ne.s32.totalorder %s36_s12, %s2800_s21  ;;  %p2806_p5 = scmp.lt.s32.totalorder %s2800_s21, %s2800_s21 }
  0x10   :  { %p2807_p6 = por %p2806_p5, %p2805_p4 }
  0x12   :  { %p2808_p7 = pnand %p2807_p6, %p2801_p3 }
  0x14   :  { %2811 = shalt.err (!%p2808_p7)
}
  0x15   :  { %38 = dma.hbm_to_vmem [thread:$0]  %s3020_s1, 128, %s36_s12, [#allocation6]  }
  0x16   :  { %s2812_s26 = scalar_lea.hbm %s3019_s0, 768 }
  0x17   :  { %p2813_p8 = scmp.ne.s32.totalorder %s3019_s0, %s2812_s26  ;;  %p2816_p9 = scmp.lt.u32.totalorder %s2812_s26, %s3019_s0 }
  0x19   :  { %p2818_p10 = pnand %p2816_p9, %p2813_p8 }
  0x1b   :  { %2821 = shalt.err (!%p2818_p10)
}
  0x1c   :  { %s2822_s10 = scalar_lea.vmem %s26_s14, 768  ;;  %p2827_p12 = scmp.lt.s32.totalorder %s26_s14, %s26_s14 }
  0x1d   :  { %p2823_p11 = scmp.ne.s32.totalorder %s26_s14, %s2822_s10  ;;  %p2828_p13 = scmp.lt.s32.totalorder %s2822_s10, %s2822_s10 }
  0x1f   :  { %p2829_p0 = por %p2828_p13, %p2827_p12 }
  0x21   :  { %p2830_p1 = pnand %p2829_p0, %p2823_p11 }
  0x23   :  { %2833 = shalt.err (!%p2830_p1)
}
  0x24   :  { %28 = dma.hbm_to_vmem [thread:$0]  %s3019_s0, 768, %s26_s14, [#allocation4]  }
  0x25   :  { %s2886_s12 = smov [#allocation7]   ;;  %s2834_s17 = scalar_lea.hbm %s3021_s2, 24576 }
  0x26   :  { %s44_s13 = sshll.u32 %s2886_s12, 4  ;;  %p2835_p2 = scmp.ne.s32.totalorder %s3021_s2, %s2834_s17  ;;  %s45_s13 = int_to_ptr.vmem [resolvable:$true] %s44_s13 }
  0x27   :  { %p2838_p3 = scmp.lt.u32.totalorder %s2834_s17, %s3021_s2 }
  0x29   :  { %p2840_p4 = pnand %p2838_p3, %p2835_p2 }
  0x2b   :  { %2843 = shalt.err (!%p2840_p4)
}
  0x2c   :  { %s2844_s21 = scalar_lea.vmem %s45_s13, 24576  ;;  %p2849_p6 = scmp.lt.s32.totalorder %s45_s13, %s45_s13 }
  0x2d   :  { %p2845_p5 = scmp.ne.s32.totalorder %s45_s13, %s2844_s21  ;;  %p2850_p7 = scmp.lt.s32.totalorder %s2844_s21, %s2844_s21 }
  0x2f   :  { %p2851_p8 = por %p2850_p7, %p2849_p6 }
  0x31   :  { %p2852_p9 = pnand %p2851_p8, %p2845_p5 }
  0x33   :  { %2855 = shalt.err (!%p2852_p9)
}
  0x34   :  { %s2887_s0 = smov 256   ;;  %s2888_s14 = smov 16  }
  0x35   :  { %50 = dma.hbm_to_vmem [thread:$0]  %s3021_s2, 24576, %s45_s13, [#allocation6], %s2887_s0, %s2887_s0, %s2888_s14  }
  0x36   :  { %s2889_s24 = smov [#allocation8]   ;;  %s2856_s28 = scalar_lea.hbm %s3023_s4, 8192 }
  0x37   :  { %s58_s25 = sshll.u32 %s2889_s24, 4  ;;  %p2857_p10 = scmp.ne.s32.totalorder %s3023_s4, %s2856_s28  ;;  %s59_s25 = int_to_ptr.vmem [resolvable:$true] %s58_s25 }
  0x38   :  { %p2860_p11 = scmp.lt.u32.totalorder %s2856_s28, %s3023_s4 }
  0x3a   :  { %p2862_p12 = pnand %p2860_p11, %p2857_p10 }
  0x3c   :  { %2865 = shalt.err (!%p2862_p12)
}
  0x3d   :  { %s2866_s11 = scalar_lea.vmem %s59_s25, 8192  ;;  %p2871_p0 = scmp.lt.s32.totalorder %s59_s25, %s59_s25 }
  0x3e   :  { %p2867_p13 = scmp.ne.s32.totalorder %s59_s25, %s2866_s11  ;;  %p2872_p1 = scmp.lt.s32.totalorder %s2866_s11, %s2866_s11 }
  0x40   :  { %p2873_p2 = por %p2872_p1, %p2871_p0 }
  0x42   :  { %p2874_p3 = pnand %p2873_p2, %p2867_p13 }
  0x44   :  { %2877 = shalt.err (!%p2874_p3)
}
  0x45   :  { %s2890_s2 = smov 128   ;;  %s2891_s12 = smov 8  }
  0x46   :  { %64 = dma.hbm_to_vmem [thread:$0]  %s3023_s4, 8192, %s59_s25, [#allocation9], %s2890_s2, %s2890_s2, %s2891_s12  }
  0x47   :  { %2878 = dma.done.wait [#allocation4], 768  }
  0x48   :  { %2879 = vsyncadd [#allocation4], 4294966528 }
  0x49   :  { %2880 = dma.done.wait [#allocation6], 24704  }
  0x4a   :  { %2881 = vsyncadd [#allocation6], 4294942592 }
  0x4b   :  { %2882 = dma.done.wait [#allocation9], 8192  }
  0x4c   :  { %2883 = vsyncadd [#allocation9], 4294959104  ;;  %v2392_v1 = vld [vmem:[#allocation7 + $0x4] ss:$16 sps:$4 sm:$0xff]   ;;  %v2394_v2 = vld [vmem:[#allocation7 + $0xc] ss:$16 sps:$4 sm:$0xff]  }
  0x4d   :  { %1272 = vmatprep.subr.bf16.mxu0 %v2392_v1  ;;  %v2396_v3 = vld [vmem:[#allocation7] ss:$16 sps:$4 sm:$0xff]   ;;  %v2397_v4 = vld [vmem:[#allocation7 + $0x8] ss:$16 sps:$4 sm:$0xff]   ;;  %1395 = vmatprep.subr.bf16.mxu1 %v2394_v2  ;;  %v2398_v5 = vld [vmem:[#allocation7 + $0x24] ss:$16 sps:$4 sm:$0xff]  }
  0x4e   :  { %1273 = vmatpush1.bf16.msra.mxu0 %v2396_v3  ;;  %1396 = vmatpush1.bf16.msra.mxu1 %v2397_v4  ;;  %v2400_v6 = vld [vmem:[#allocation7 + $0x2c] ss:$16 sps:$4 sm:$0xff]   ;;  %v2402_v7 = vld [vmem:[#allocation7 + $0x20] ss:$16 sps:$4 sm:$0xff]   ;;  %v2403_v8 = vld [vmem:[#allocation7 + $0x28] ss:$16 sps:$4 sm:$0xff]  }
  0x4f   :  { %1274 = vmatprep.subr.bf16.mxu0 %v2398_v5  ;;  %1397 = vmatprep.subr.bf16.mxu1 %v2400_v6  ;;  %v2404_v9 = vld [vmem:[#allocation7 + $0x44] ss:$16 sps:$4 sm:$0xff]   ;;  %v2406_v10 = vld [vmem:[#allocation7 + $0x4c] ss:$16 sps:$4 sm:$0xff]   ;;  %v2408_v11 = vld [vmem:[#allocation7 + $0x40] ss:$16 sps:$4 sm:$0xff]  }
  0x50   :  { %v2409_v12 = vld [vmem:[#allocation7 + $0x48] ss:$16 sps:$4 sm:$0xff]   ;;  %v2410_v13 = vld [vmem:[#allocation7 + $0x64] ss:$16 sps:$4 sm:$0xff]   ;;  %v2412_v14 = vld [vmem:[#allocation7 + $0x6c] ss:$16 sps:$4 sm:$0xff]  }
  0x51   :  { %v2414_v15 = vld [vmem:[#allocation7 + $0x60] ss:$16 sps:$4 sm:$0xff]   ;;  %v2415_v16 = vld [vmem:[#allocation7 + $0x68] ss:$16 sps:$4 sm:$0xff]   ;;  %v2416_v17 = vld [vmem:[#allocation7 + $0x84] ss:$16 sps:$4 sm:$0xff]  }
  0x52   :  { %1275 = vmatpush1.bf16.msra.mxu0 %v2402_v7  ;;  %1398 = vmatpush1.bf16.msra.mxu1 %v2403_v8  ;;  %v2418_v18 = vld [vmem:[#allocation7 + $0x8c] ss:$16 sps:$4 sm:$0xff]   ;;  %v2420_v19 = vld [vmem:[#allocation7 + $0x80] ss:$16 sps:$4 sm:$0xff]   ;;  %v2421_v20 = vld [vmem:[#allocation7 + $0x88] ss:$16 sps:$4 sm:$0xff]  }
  0x53   :  { %1276 = vmatprep.subr.bf16.mxu0 %v2404_v9  ;;  %1399 = vmatprep.subr.bf16.mxu1 %v2406_v10  ;;  %v2422_v21 = vld [vmem:[#allocation7 + $0xa4] ss:$16 sps:$4 sm:$0xff]   ;;  %v2424_v22 = vld [vmem:[#allocation7 + $0xac] ss:$16 sps:$4 sm:$0xff]   ;;  %v2426_v23 = vld [vmem:[#allocation7 + $0xa0] ss:$16 sps:$4 sm:$0xff]  }
  0x54   :  { %v2427_v24 = vld [vmem:[#allocation7 + $0xa8] ss:$16 sps:$4 sm:$0xff]   ;;  %v2428_v25 = vld [vmem:[#allocation7 + $0xc4] ss:$16 sps:$4 sm:$0xff]   ;;  %v2430_v26 = vld [vmem:[#allocation7 + $0xcc] ss:$16 sps:$4 sm:$0xff]  }
  0x55   :  { %v2432_v27 = vld [vmem:[#allocation7 + $0xc0] ss:$16 sps:$4 sm:$0xff]   ;;  %v2433_v28 = vld [vmem:[#allocation7 + $0xc8] ss:$16 sps:$4 sm:$0xff]   ;;  %v2434_v29 = vld [vmem:[#allocation7 + $0xe4] ss:$16 sps:$4 sm:$0xff]  }
  0x56   :  { %1277 = vmatpush1.bf16.msra.mxu0 %v2408_v11  ;;  %1400 = vmatpush1.bf16.msra.mxu1 %v2409_v12  ;;  %v2436_v30 = vld [vmem:[#allocation7 + $0xec] ss:$16 sps:$4 sm:$0xff]   ;;  %v2438_v31 = vld [vmem:[#allocation7 + $0xe0] ss:$16 sps:$4 sm:$0xff]   ;;  %v2439_v32 = vld [vmem:[#allocation7 + $0xe8] ss:$16 sps:$4 sm:$0xff]  }
  0x57   :  { %1278 = vmatprep.subr.bf16.mxu0 %v2410_v13  ;;  %1401 = vmatprep.subr.bf16.mxu1 %v2412_v14  ;;  %v2440_v33 = vld [vmem:[#allocation7 + $0x104] ss:$16 sps:$4 sm:$0xff]   ;;  %v2442_v34 = vld [vmem:[#allocation7 + $0x10c] ss:$16 sps:$4 sm:$0xff]   ;;  %v2444_v35 = vld [vmem:[#allocation7 + $0x100] ss:$16 sps:$4 sm:$0xff]  }
  0x58   :  { %v2445_v36 = vld [vmem:[#allocation7 + $0x108] ss:$16 sps:$4 sm:$0xff]   ;;  %v2446_v37 = vld [vmem:[#allocation7 + $0x124] ss:$16 sps:$4 sm:$0xff]   ;;  %v2448_v38 = vld [vmem:[#allocation7 + $0x12c] ss:$16 sps:$4 sm:$0xff]  }
  0x59   :  { %v2450_v39 = vld [vmem:[#allocation7 + $0x120] ss:$16 sps:$4 sm:$0xff]   ;;  %v2451_v40 = vld [vmem:[#allocation7 + $0x128] ss:$16 sps:$4 sm:$0xff]   ;;  %v2452_v41 = vld [vmem:[#allocation7 + $0x144] ss:$16 sps:$4 sm:$0xff]  }
  0x5a   :  { %1279 = vmatpush1.bf16.msra.mxu0 %v2414_v15  ;;  %1402 = vmatpush1.bf16.msra.mxu1 %v2415_v16  ;;  %v2454_v42 = vld [vmem:[#allocation7 + $0x14c] ss:$16 sps:$4 sm:$0xff]   ;;  %v2456_v43 = vld [vmem:[#allocation7 + $0x140] ss:$16 sps:$4 sm:$0xff]   ;;  %v2457_v44 = vld [vmem:[#allocation7 + $0x148] ss:$16 sps:$4 sm:$0xff]  }
  0x5b   :  { %1280 = vmatprep.subr.bf16.mxu0 %v2416_v17  ;;  %1403 = vmatprep.subr.bf16.mxu1 %v2418_v18  ;;  %v2458_v45 = vld [vmem:[#allocation7 + $0x164] ss:$16 sps:$4 sm:$0xff]   ;;  %v2460_v46 = vld [vmem:[#allocation7 + $0x16c] ss:$16 sps:$4 sm:$0xff]   ;;  %v2462_v48 = vld [vmem:[#allocation7 + $0x160] ss:$16 sps:$4 sm:$0xff]  }
  0x5c   :  { %v87_v47 = vld [vmem:[#allocation3 + $0x8] sm:$0xff]  ;;  %v2463_v50 = vld [vmem:[#allocation7 + $0x168] ss:$16 sps:$4 sm:$0xff]   ;;  %v2466_v52 = vld [vmem:[#allocation7 + $0x18c] ss:$16 sps:$4 sm:$0xff]   ;;  %vm1602_vm0 = vcmask 1043456  }
  0x5d   :  { %v93_v49 = vpack.c.bf16 %v87_v47, %v87_v47  ;;  %v2464_v51 = vld [vmem:[#allocation7 + $0x184] ss:$16 sps:$4 sm:$0xff]   ;;  %v2468_v53 = vld [vmem:[#allocation7 + $0x180] ss:$16 sps:$4 sm:$0xff]   ;;  %v2469_v54 = vld [vmem:[#allocation7 + $0x188] ss:$16 sps:$4 sm:$0xff]  }
  0x5e   :  { %1281 = vmatpush1.bf16.msra.mxu0 %v2420_v19  ;;  %1404 = vmatpush1.bf16.msra.mxu1 %v2421_v20  ;;  %v2470_v55 = vld [vmem:[#allocation7 + $0x1a4] ss:$16 sps:$4 sm:$0xff]   ;;  %v2472_v56 = vld [vmem:[#allocation7 + $0x1ac] ss:$16 sps:$4 sm:$0xff]   ;;  %v2474_v57 = vld [vmem:[#allocation7 + $0x1a0] ss:$16 sps:$4 sm:$0xff]  }
  0x5f   :  { %1282 = vmatprep.subr.bf16.mxu0 %v2422_v21  ;;  %1405 = vmatprep.subr.bf16.mxu1 %v2424_v22  ;;  %v2475_v58 = vld [vmem:[#allocation7 + $0x1a8] ss:$16 sps:$4 sm:$0xff]   ;;  %v2476_v59 = vld [vmem:[#allocation7 + $0x1c4] ss:$16 sps:$4 sm:$0xff]   ;;  %v2478_v60 = vld [vmem:[#allocation7 + $0x1cc] ss:$16 sps:$4 sm:$0xff]  }
  0x60   :  { %1304 = vmatprep.mubr.bf16.mxu0 %v93_v49  ;;  %1427 = vmatprep.mubr.bf16.mxu1 %v93_v49  ;;  %v2480_v61 = vld [vmem:[#allocation7 + $0x1c0] ss:$16 sps:$4 sm:$0xff]   ;;  %v2481_v62 = vld [vmem:[#allocation7 + $0x1c8] ss:$16 sps:$4 sm:$0xff]   ;;  %v2482_v63 = vld [vmem:[#allocation7 + $0x1e4] ss:$16 sps:$4 sm:$0xff]  }
  0x61   :  { %v2484_v0 = vld [vmem:[#allocation7 + $0x1ec] ss:$16 sps:$4 sm:$0xff]   ;;  %v2486_v1 = vld [vmem:[#allocation7 + $0x1e0] ss:$16 sps:$4 sm:$0xff]   ;;  %v2487_v2 = vld [vmem:[#allocation7 + $0x1e8] ss:$16 sps:$4 sm:$0xff]  }
  0x62   :  { %1283 = vmatpush1.bf16.msra.mxu0 %v2426_v23  ;;  %1406 = vmatpush1.bf16.msra.mxu1 %v2427_v24  ;;  %v86_v3 = vld [vmem:[#allocation3] sm:$0xff]  ;;  %v2490_v4 = vld [vmem:[#allocation7 + $0x204] ss:$16 sps:$4 sm:$0xff]   ;;  %v2488_v7 = vld [vmem:[#allocation7 + $0x200] ss:$16 sps:$4 sm:$0xff]   ;;  %vm1598_vm1 = vcmask 64512  }
  0x63   :  { %1284 = vmatprep.subr.bf16.mxu0 %v2428_v25  ;;  %1407 = vmatprep.subr.bf16.mxu1 %v2430_v26  ;;  %v2493_v5 = vld [vmem:[#allocation7 + $0x20c] ss:$16 sps:$4 sm:$0xff]   ;;  %v92_v6 = vpack.c.bf16 %v86_v3, %v86_v3  ;;  %v2491_v8 = vld [vmem:[#allocation7 + $0x208] ss:$16 sps:$4 sm:$0xff]   ;;  %v2496_v9 = vld [vmem:[#allocation7 + $0x224] ss:$16 sps:$4 sm:$0xff]  }
  0x64   :  { %v2499_v10 = vld [vmem:[#allocation7 + $0x22c] ss:$16 sps:$4 sm:$0xff]   ;;  %v2494_v11 = vld [vmem:[#allocation7 + $0x220] ss:$16 sps:$4 sm:$0xff]   ;;  %v2497_v12 = vld [vmem:[#allocation7 + $0x228] ss:$16 sps:$4 sm:$0xff]  }
  0x65   :  { %v2502_v13 = vld [vmem:[#allocation7 + $0x244] ss:$16 sps:$4 sm:$0xff]   ;;  %v2505_v14 = vld [vmem:[#allocation7 + $0x24c] ss:$16 sps:$4 sm:$0xff]   ;;  %v2500_v15 = vld [vmem:[#allocation7 + $0x240] ss:$16 sps:$4 sm:$0xff]  }
  0x66   :  { %1285 = vmatpush1.bf16.msra.mxu0 %v2432_v27  ;;  %1408 = vmatpush1.bf16.msra.mxu1 %v2433_v28  ;;  %v2503_v16 = vld [vmem:[#allocation7 + $0x248] ss:$16 sps:$4 sm:$0xff]   ;;  %v2508_v17 = vld [vmem:[#allocation7 + $0x264] ss:$16 sps:$4 sm:$0xff]   ;;  %v2511_v18 = vld [vmem:[#allocation7 + $0x26c] ss:$16 sps:$4 sm:$0xff]  }
  0x67   :  { %1286 = vmatprep.subr.bf16.mxu0 %v2434_v29  ;;  %1409 = vmatprep.subr.bf16.mxu1 %v2436_v30  ;;  %v2506_v19 = vld [vmem:[#allocation7 + $0x260] ss:$16 sps:$4 sm:$0xff]   ;;  %v2509_v20 = vld [vmem:[#allocation7 + $0x268] ss:$16 sps:$4 sm:$0xff]   ;;  %v2514_v21 = vld [vmem:[#allocation7 + $0x284] ss:$16 sps:$4 sm:$0xff]  }
  0x68   :  { %v2517_v22 = vld [vmem:[#allocation7 + $0x28c] ss:$16 sps:$4 sm:$0xff]   ;;  %v2512_v23 = vld [vmem:[#allocation7 + $0x280] ss:$16 sps:$4 sm:$0xff]   ;;  %v2515_v24 = vld [vmem:[#allocation7 + $0x288] ss:$16 sps:$4 sm:$0xff]  }
  0x69   :  { %v2520_v25 = vld [vmem:[#allocation7 + $0x2a4] ss:$16 sps:$4 sm:$0xff]   ;;  %v2523_v26 = vld [vmem:[#allocation7 + $0x2ac] ss:$16 sps:$4 sm:$0xff]   ;;  %v2518_v27 = vld [vmem:[#allocation7 + $0x2a0] ss:$16 sps:$4 sm:$0xff]  }
  0x6a   :  { %1287 = vmatpush1.bf16.msra.mxu0 %v2438_v31  ;;  %1410 = vmatpush1.bf16.msra.mxu1 %v2439_v32  ;;  %v2521_v28 = vld [vmem:[#allocation7 + $0x2a8] ss:$16 sps:$4 sm:$0xff]   ;;  %v2526_v29 = vld [vmem:[#allocation7 + $0x2c4] ss:$16 sps:$4 sm:$0xff]   ;;  %v2529_v30 = vld [vmem:[#allocation7 + $0x2cc] ss:$16 sps:$4 sm:$0xff]  }
  0x6b   :  { %1288 = vmatprep.subr.bf16.mxu0 %v2440_v33  ;;  %1411 = vmatprep.subr.bf16.mxu1 %v2442_v34  ;;  %v89_v31 = vld [vmem:[#allocation3 + $0x18] sm:$0xff]  ;;  %v2527_v34 = vld [vmem:[#allocation7 + $0x2c8] ss:$16 sps:$4 sm:$0xff]   ;;  %vm2093_vm2 = vcmask 7168  }
  0x6c   :  { %v2524_v32 = vld [vmem:[#allocation7 + $0x2c0] ss:$16 sps:$4 sm:$0xff]   ;;  %v95_v33 = vpack.c.bf16 %v89_v31, %v89_v31  ;;  %v2550_v47 = vld [vmem:[#allocation7 + $0x344] ss:$16 sps:$4 sm:$0xff]  }
  0x6d   :  { %v2548_v49 = vld [vmem:[#allocation7 + $0x340] ss:$16 sps:$4 sm:$0xff]   ;;  %v2580_v3 = vld [vmem:[#allocation7 + $0x3e4] ss:$16 sps:$4 sm:$0xff]  }
  0x6e   :  { %1289 = vmatpush1.bf16.msra.mxu0 %v2444_v35  ;;  %1412 = vmatpush1.bf16.msra.mxu1 %v2445_v36  ;;  %v2532_v35 = vld [vmem:[#allocation7 + $0x2e4] ss:$16 sps:$4 sm:$0xff]   ;;  %v2535_v36 = vld [vmem:[#allocation7 + $0x2ec] ss:$16 sps:$4 sm:$0xff]  }
  0x6f   :  { %1290 = vmatprep.subr.bf16.mxu0 %v2446_v37  ;;  %1413 = vmatprep.subr.bf16.mxu1 %v2448_v38  ;;  %v2530_v37 = vld [vmem:[#allocation7 + $0x2e0] ss:$16 sps:$4 sm:$0xff]   ;;  %v2533_v38 = vld [vmem:[#allocation7 + $0x2e8] ss:$16 sps:$4 sm:$0xff]   ;;  %v2616_v31 = vld [vmem:[#allocation7 + $0x4a4] ss:$16 sps:$4 sm:$0xff]  }
  0x72   :  { %1291 = vmatpush1.bf16.msra.mxu0 %v2450_v39  ;;  %1414 = vmatpush1.bf16.msra.mxu1 %v2451_v40  ;;  %v2538_v39 = vld [vmem:[#allocation7 + $0x304] ss:$16 sps:$4 sm:$0xff]   ;;  %v2541_v40 = vld [vmem:[#allocation7 + $0x30c] ss:$16 sps:$4 sm:$0xff]  }
  0x73   :  { %1292 = vmatprep.subr.bf16.mxu0 %v2452_v41  ;;  %1415 = vmatprep.subr.bf16.mxu1 %v2454_v42  ;;  %v2536_v41 = vld [vmem:[#allocation7 + $0x300] ss:$16 sps:$4 sm:$0xff]   ;;  %v2539_v42 = vld [vmem:[#allocation7 + $0x308] ss:$16 sps:$4 sm:$0xff]  }
  0x76   :  { %1293 = vmatpush1.bf16.msra.mxu0 %v2456_v43  ;;  %1416 = vmatpush1.bf16.msra.mxu1 %v2457_v44  ;;  %v2544_v43 = vld [vmem:[#allocation7 + $0x324] ss:$16 sps:$4 sm:$0xff]   ;;  %v2547_v44 = vld [vmem:[#allocation7 + $0x32c] ss:$16 sps:$4 sm:$0xff]  }
  0x77   :  { %1294 = vmatprep.subr.bf16.mxu0 %v2458_v45  ;;  %1417 = vmatprep.subr.bf16.mxu1 %v2460_v46  ;;  %v2542_v45 = vld [vmem:[#allocation7 + $0x320] ss:$16 sps:$4 sm:$0xff]   ;;  %v2545_v46 = vld [vmem:[#allocation7 + $0x328] ss:$16 sps:$4 sm:$0xff]  }
  0x7a   :  { %1295 = vmatpush1.bf16.msra.mxu0 %v2462_v48  ;;  %1418 = vmatpush1.bf16.msra.mxu1 %v2463_v50  ;;  %v2553_v48 = vld [vmem:[#allocation7 + $0x34c] ss:$16 sps:$4 sm:$0xff]   ;;  %v2551_v50 = vld [vmem:[#allocation7 + $0x348] ss:$16 sps:$4 sm:$0xff]  }
  0x7b   :  { %1296 = vmatprep.subr.bf16.mxu0 %v2464_v51  ;;  %1419 = vmatprep.subr.bf16.mxu1 %v2466_v52  ;;  %v2556_v51 = vld [vmem:[#allocation7 + $0x364] ss:$16 sps:$4 sm:$0xff]   ;;  %v2559_v52 = vld [vmem:[#allocation7 + $0x36c] ss:$16 sps:$4 sm:$0xff]  }
  0x7e   :  { %1297 = vmatpush1.bf16.msra.mxu0 %v2468_v53  ;;  %1420 = vmatpush1.bf16.msra.mxu1 %v2469_v54  ;;  %v2554_v53 = vld [vmem:[#allocation7 + $0x360] ss:$16 sps:$4 sm:$0xff]   ;;  %v2557_v54 = vld [vmem:[#allocation7 + $0x368] ss:$16 sps:$4 sm:$0xff]  }
  0x7f   :  { %1298 = vmatprep.subr.bf16.mxu0 %v2470_v55  ;;  %1421 = vmatprep.subr.bf16.mxu1 %v2472_v56  ;;  %v2562_v55 = vld [vmem:[#allocation7 + $0x384] ss:$16 sps:$4 sm:$0xff]   ;;  %v2565_v56 = vld [vmem:[#allocation7 + $0x38c] ss:$16 sps:$4 sm:$0xff]  }
  0x82   :  { %1299 = vmatpush1.bf16.msra.mxu0 %v2474_v57  ;;  %1422 = vmatpush1.bf16.msra.mxu1 %v2475_v58  ;;  %v2560_v57 = vld [vmem:[#allocation7 + $0x380] ss:$16 sps:$4 sm:$0xff]   ;;  %v2563_v58 = vld [vmem:[#allocation7 + $0x388] ss:$16 sps:$4 sm:$0xff]  }
  0x83   :  { %1300 = vmatprep.subr.bf16.mxu0 %v2476_v59  ;;  %1423 = vmatprep.subr.bf16.mxu1 %v2478_v60  ;;  %v2568_v59 = vld [vmem:[#allocation7 + $0x3a4] ss:$16 sps:$4 sm:$0xff]   ;;  %v2571_v60 = vld [vmem:[#allocation7 + $0x3ac] ss:$16 sps:$4 sm:$0xff]  }
  0x86   :  { %1301 = vmatpush1.bf16.msra.mxu0 %v2480_v61  ;;  %1424 = vmatpush1.bf16.msra.mxu1 %v2481_v62  ;;  %v2566_v61 = vld [vmem:[#allocation7 + $0x3a0] ss:$16 sps:$4 sm:$0xff]   ;;  %v2569_v62 = vld [vmem:[#allocation7 + $0x3a8] ss:$16 sps:$4 sm:$0xff]  }
  0x87   :  { %1302 = vmatprep.subr.bf16.mxu0 %v2482_v63  ;;  %1425 = vmatprep.subr.bf16.mxu1 %v2484_v0  ;;  %v2574_v63 = vld [vmem:[#allocation7 + $0x3c4] ss:$16 sps:$4 sm:$0xff]   ;;  %v2577_v0 = vld [vmem:[#allocation7 + $0x3cc] ss:$16 sps:$4 sm:$0xff]  }
  0x8a   :  { %1303 = vmatpush1.bf16.msra.mxu0 %v2486_v1  ;;  %1426 = vmatpush1.bf16.msra.mxu1 %v2487_v2  ;;  %v2572_v1 = vld [vmem:[#allocation7 + $0x3c0] ss:$16 sps:$4 sm:$0xff]   ;;  %v2575_v2 = vld [vmem:[#allocation7 + $0x3c8] ss:$16 sps:$4 sm:$0xff]  }
  0x8b   :  { %1313 = vmatprep.subr.bf16.mxu0 %v2490_v4  ;;  %1436 = vmatprep.subr.bf16.mxu1 %v2493_v5  ;;  %v2583_v4 = vld [vmem:[#allocation7 + $0x3ec] ss:$16 sps:$4 sm:$0xff]   ;;  %v2578_v5 = vld [vmem:[#allocation7 + $0x3e0] ss:$16 sps:$4 sm:$0xff]  }
  0x8d   :  { %1305 = vmatmul.mubr.bf16.vlgmr.msra.gmra.mrb[0].mxu0 %v92_v6  ;;  %1428 = vmatmul.mubr.bf16.vlgmr.msra.gmra.mrb[0].mxu1 %v92_v6  ;;  %v2581_v6 = vld [vmem:[#allocation7 + $0x3e8] ss:$16 sps:$4 sm:$0xff]  }
  0x8e   :  { %1314 = vmatpush1.bf16.msra.mxu0 %v2488_v7  ;;  %1437 = vmatpush1.bf16.msra.mxu1 %v2491_v8  ;;  %v2586_v7 = vld [vmem:[#allocation7 + $0x404] ss:$16 sps:$4 sm:$0xff]   ;;  %v88_v8 = vld [vmem:[#allocation3 + $0x10] sm:$0xff] }
  0x8f   :  { %1315 = vmatprep.subr.bf16.mxu0 %v2496_v9  ;;  %1438 = vmatprep.subr.bf16.mxu1 %v2499_v10  ;;  %v2589_v9 = vld [vmem:[#allocation7 + $0x40c] ss:$16 sps:$4 sm:$0xff]   ;;  %v2584_v10 = vld [vmem:[#allocation7 + $0x400] ss:$16 sps:$4 sm:$0xff]  }
  0x90   :  { %1345 = vmatprep.mubr.bf16.mxu0 %v95_v33  ;;  %1468 = vmatprep.mubr.bf16.mxu1 %v95_v33  ;;  %v2614_v33 = vld [vmem:[#allocation7 + $0x4a0] ss:$16 sps:$4 sm:$0xff]  }
  0x92   :  { %1316 = vmatpush1.bf16.msra.mxu0 %v2494_v11  ;;  %1439 = vmatpush1.bf16.msra.mxu1 %v2497_v12  ;;  %v94_v11 = vpack.c.bf16 %v88_v8, %v88_v8  ;;  %v2587_v12 = vld [vmem:[#allocation7 + $0x408] ss:$16 sps:$4 sm:$0xff]   ;;  %v2679_v8 = vld [vmem:[#allocation7 + $0x5ec] ss:$16 sps:$4 sm:$0xff]  }
  0x93   :  { %1317 = vmatprep.subr.bf16.mxu0 %v2502_v13  ;;  %1440 = vmatprep.subr.bf16.mxu1 %v2505_v14  ;;  %v2592_v13 = vld [vmem:[#allocation7 + $0x424] ss:$16 sps:$4 sm:$0xff]   ;;  %v2595_v14 = vld [vmem:[#allocation7 + $0x42c] ss:$16 sps:$4 sm:$0xff]  }
  0x96   :  { %1318 = vmatpush1.bf16.msra.mxu0 %v2500_v15  ;;  %1441 = vmatpush1.bf16.msra.mxu1 %v2503_v16  ;;  %v91_v15 = vld [vmem:[#allocation3 + $0x28] sm:$0xff] }
  0x97   :  { %1319 = vmatprep.subr.bf16.mxu0 %v2508_v17  ;;  %1442 = vmatprep.subr.bf16.mxu1 %v2511_v18  ;;  %v97_v16 = vpack.c.bf16 %v91_v15, %v91_v15  ;;  %v2590_v17 = vld [vmem:[#allocation7 + $0x420] ss:$16 sps:$4 sm:$0xff]   ;;  %v2593_v18 = vld [vmem:[#allocation7 + $0x428] ss:$16 sps:$4 sm:$0xff]   ;;  %v2684_v15 = vld [vmem:[#allocation8 + $0x4] ss:$8 sps:$4 sm:$0xff]  }
  0x9a   :  { %1320 = vmatpush1.bf16.msra.mxu0 %v2506_v19  ;;  %1443 = vmatpush1.bf16.msra.mxu1 %v2509_v20  ;;  %v2598_v19 = vld [vmem:[#allocation7 + $0x444] ss:$16 sps:$4 sm:$0xff]   ;;  %v2601_v20 = vld [vmem:[#allocation7 + $0x44c] ss:$16 sps:$4 sm:$0xff]  }
  0x9b   :  { %1321 = vmatprep.subr.bf16.mxu0 %v2514_v21  ;;  %1444 = vmatprep.subr.bf16.mxu1 %v2517_v22  ;;  %v2596_v21 = vld [vmem:[#allocation7 + $0x440] ss:$16 sps:$4 sm:$0xff]   ;;  %v2599_v22 = vld [vmem:[#allocation7 + $0x448] ss:$16 sps:$4 sm:$0xff]  }
  0x9e   :  { %1322 = vmatpush1.bf16.msra.mxu0 %v2512_v23  ;;  %1445 = vmatpush1.bf16.msra.mxu1 %v2515_v24  ;;  %v2604_v23 = vld [vmem:[#allocation7 + $0x464] ss:$16 sps:$4 sm:$0xff]   ;;  %v2607_v24 = vld [vmem:[#allocation7 + $0x46c] ss:$16 sps:$4 sm:$0xff]  }
  0x9f   :  { %1323 = vmatprep.subr.bf16.mxu0 %v2520_v25  ;;  %1446 = vmatprep.subr.bf16.mxu1 %v2523_v26  ;;  %v2602_v25 = vld [vmem:[#allocation7 + $0x460] ss:$16 sps:$4 sm:$0xff]   ;;  %v2605_v26 = vld [vmem:[#allocation7 + $0x468] ss:$16 sps:$4 sm:$0xff]  }
  0xa2   :  { %1324 = vmatpush1.bf16.msra.mxu0 %v2518_v27  ;;  %1447 = vmatpush1.bf16.msra.mxu1 %v2521_v28  ;;  %v2610_v27 = vld [vmem:[#allocation7 + $0x484] ss:$16 sps:$4 sm:$0xff]   ;;  %v2613_v28 = vld [vmem:[#allocation7 + $0x48c] ss:$16 sps:$4 sm:$0xff]  }
  0xa3   :  { %1325 = vmatprep.subr.bf16.mxu0 %v2526_v29  ;;  %1448 = vmatprep.subr.bf16.mxu1 %v2529_v30  ;;  %v2608_v29 = vld [vmem:[#allocation7 + $0x480] ss:$16 sps:$4 sm:$0xff]   ;;  %v2611_v30 = vld [vmem:[#allocation7 + $0x488] ss:$16 sps:$4 sm:$0xff]  }
  0xa6   :  { %1326 = vmatpush1.bf16.msra.mxu0 %v2524_v32  ;;  %1449 = vmatpush1.bf16.msra.mxu1 %v2527_v34  ;;  %v2619_v32 = vld [vmem:[#allocation7 + $0x4ac] ss:$16 sps:$4 sm:$0xff]   ;;  %v2617_v34 = vld [vmem:[#allocation7 + $0x4a8] ss:$16 sps:$4 sm:$0xff]  }
  0xa7   :  { %1327 = vmatprep.subr.bf16.mxu0 %v2532_v35  ;;  %1450 = vmatprep.subr.bf16.mxu1 %v2535_v36  ;;  %v2622_v35 = vld [vmem:[#allocation7 + $0x4c4] ss:$16 sps:$4 sm:$0xff]   ;;  %v2625_v36 = vld [vmem:[#allocation7 + $0x4cc] ss:$16 sps:$4 sm:$0xff]  }
  0xaa   :  { %1328 = vmatpush1.bf16.msra.mxu0 %v2530_v37  ;;  %1451 = vmatpush1.bf16.msra.mxu1 %v2533_v38  ;;  %v2620_v37 = vld [vmem:[#allocation7 + $0x4c0] ss:$16 sps:$4 sm:$0xff]   ;;  %v2623_v38 = vld [vmem:[#allocation7 + $0x4c8] ss:$16 sps:$4 sm:$0xff]  }
  0xab   :  { %1329 = vmatprep.subr.bf16.mxu0 %v2538_v39  ;;  %1452 = vmatprep.subr.bf16.mxu1 %v2541_v40  ;;  %v2628_v39 = vld [vmem:[#allocation7 + $0x4e4] ss:$16 sps:$4 sm:$0xff]   ;;  %v2631_v40 = vld [vmem:[#allocation7 + $0x4ec] ss:$16 sps:$4 sm:$0xff]  }
  0xae   :  { %1330 = vmatpush1.bf16.msra.mxu0 %v2536_v41  ;;  %1453 = vmatpush1.bf16.msra.mxu1 %v2539_v42  ;;  %v2626_v41 = vld [vmem:[#allocation7 + $0x4e0] ss:$16 sps:$4 sm:$0xff]   ;;  %v2629_v42 = vld [vmem:[#allocation7 + $0x4e8] ss:$16 sps:$4 sm:$0xff]  }
  0xaf   :  { %1331 = vmatprep.subr.bf16.mxu0 %v2544_v43  ;;  %1454 = vmatprep.subr.bf16.mxu1 %v2547_v44  ;;  %v2634_v43 = vld [vmem:[#allocation7 + $0x504] ss:$16 sps:$4 sm:$0xff]   ;;  %v2637_v44 = vld [vmem:[#allocation7 + $0x50c] ss:$16 sps:$4 sm:$0xff]  }
  0xb2   :  { %1332 = vmatpush1.bf16.msra.mxu0 %v2542_v45  ;;  %1455 = vmatpush1.bf16.msra.mxu1 %v2545_v46  ;;  %v2632_v45 = vld [vmem:[#allocation7 + $0x500] ss:$16 sps:$4 sm:$0xff]   ;;  %v2635_v46 = vld [vmem:[#allocation7 + $0x508] ss:$16 sps:$4 sm:$0xff]  }
  0xb3   :  { %1333 = vmatprep.subr.bf16.mxu0 %v2550_v47  ;;  %1456 = vmatprep.subr.bf16.mxu1 %v2553_v48  ;;  %v2640_v47 = vld [vmem:[#allocation7 + $0x524] ss:$16 sps:$4 sm:$0xff]   ;;  %v2643_v48 = vld [vmem:[#allocation7 + $0x52c] ss:$16 sps:$4 sm:$0xff]  }
  0xb6   :  { %1334 = vmatpush1.bf16.msra.mxu0 %v2548_v49  ;;  %1457 = vmatpush1.bf16.msra.mxu1 %v2551_v50  ;;  %v2638_v49 = vld [vmem:[#allocation7 + $0x520] ss:$16 sps:$4 sm:$0xff]   ;;  %v2641_v50 = vld [vmem:[#allocation7 + $0x528] ss:$16 sps:$4 sm:$0xff]  }
  0xb7   :  { %1335 = vmatprep.subr.bf16.mxu0 %v2556_v51  ;;  %1458 = vmatprep.subr.bf16.mxu1 %v2559_v52  ;;  %v2646_v51 = vld [vmem:[#allocation7 + $0x544] ss:$16 sps:$4 sm:$0xff]   ;;  %v2649_v52 = vld [vmem:[#allocation7 + $0x54c] ss:$16 sps:$4 sm:$0xff]  }
  0xba   :  { %1336 = vmatpush1.bf16.msra.mxu0 %v2554_v53  ;;  %1459 = vmatpush1.bf16.msra.mxu1 %v2557_v54  ;;  %v2644_v53 = vld [vmem:[#allocation7 + $0x540] ss:$16 sps:$4 sm:$0xff]   ;;  %v2647_v54 = vld [vmem:[#allocation7 + $0x548] ss:$16 sps:$4 sm:$0xff]  }
  0xbb   :  { %1337 = vmatprep.subr.bf16.mxu0 %v2562_v55  ;;  %1460 = vmatprep.subr.bf16.mxu1 %v2565_v56  ;;  %v2652_v55 = vld [vmem:[#allocation7 + $0x564] ss:$16 sps:$4 sm:$0xff]   ;;  %v2655_v56 = vld [vmem:[#allocation7 + $0x56c] ss:$16 sps:$4 sm:$0xff]  }
  0xbe   :  { %1338 = vmatpush1.bf16.msra.mxu0 %v2560_v57  ;;  %1461 = vmatpush1.bf16.msra.mxu1 %v2563_v58  ;;  %v2650_v57 = vld [vmem:[#allocation7 + $0x560] ss:$16 sps:$4 sm:$0xff]   ;;  %v2653_v58 = vld [vmem:[#allocation7 + $0x568] ss:$16 sps:$4 sm:$0xff]  }
  0xbf   :  { %1339 = vmatprep.subr.bf16.mxu0 %v2568_v59  ;;  %1462 = vmatprep.subr.bf16.mxu1 %v2571_v60  ;;  %v2658_v59 = vld [vmem:[#allocation7 + $0x584] ss:$16 sps:$4 sm:$0xff]   ;;  %v2661_v60 = vld [vmem:[#allocation7 + $0x58c] ss:$16 sps:$4 sm:$0xff]  }
  0xc2   :  { %1340 = vmatpush1.bf16.msra.mxu0 %v2566_v61  ;;  %1463 = vmatpush1.bf16.msra.mxu1 %v2569_v62  ;;  %v2656_v61 = vld [vmem:[#allocation7 + $0x580] ss:$16 sps:$4 sm:$0xff]   ;;  %v2659_v62 = vld [vmem:[#allocation7 + $0x588] ss:$16 sps:$4 sm:$0xff]  }
  0xc3   :  { %1341 = vmatprep.subr.bf16.mxu0 %v2574_v63  ;;  %1464 = vmatprep.subr.bf16.mxu1 %v2577_v0  ;;  %v2664_v63 = vld [vmem:[#allocation7 + $0x5a4] ss:$16 sps:$4 sm:$0xff]   ;;  %v2667_v0 = vld [vmem:[#allocation7 + $0x5ac] ss:$16 sps:$4 sm:$0xff]  }
  0xc6   :  { %1342 = vmatpush1.bf16.msra.mxu0 %v2572_v1  ;;  %1465 = vmatpush1.bf16.msra.mxu1 %v2575_v2  ;;  %v2662_v1 = vld [vmem:[#allocation7 + $0x5a0] ss:$16 sps:$4 sm:$0xff]   ;;  %v2665_v2 = vld [vmem:[#allocation7 + $0x5a8] ss:$16 sps:$4 sm:$0xff]  }
  0xc7   :  { %1343 = vmatprep.subr.bf16.mxu0 %v2580_v3  ;;  %1466 = vmatprep.subr.bf16.mxu1 %v2583_v4  ;;  %v2670_v3 = vld [vmem:[#allocation7 + $0x5c4] ss:$16 sps:$4 sm:$0xff]   ;;  %v2673_v4 = vld [vmem:[#allocation7 + $0x5cc] ss:$16 sps:$4 sm:$0xff]  }
  0xca   :  { %1344 = vmatpush1.bf16.msra.mxu0 %v2578_v5  ;;  %1467 = vmatpush1.bf16.msra.mxu1 %v2581_v6  ;;  %v2668_v5 = vld [vmem:[#allocation7 + $0x5c0] ss:$16 sps:$4 sm:$0xff]   ;;  %v2671_v6 = vld [vmem:[#allocation7 + $0x5c8] ss:$16 sps:$4 sm:$0xff]  }
  0xcb   :  { %1354 = vmatprep.subr.bf16.mxu0 %v2586_v7  ;;  %1477 = vmatprep.subr.bf16.mxu1 %v2589_v9  ;;  %v2676_v7 = vld [vmem:[#allocation7 + $0x5e4] ss:$16 sps:$4 sm:$0xff]  }
  0xcc   :  { %v1592_v9 = vld [vmem:[%s3024_s5] sm:$0xff] }
  0xcd   :  { %1346 = vmatmul.mubr.bf16.vlgmr.msra.gmra.mrb[0].mxu0 %v94_v11  ;;  %1469 = vmatmul.mubr.bf16.vlgmr.msra.gmra.mrb[0].mxu1 %v94_v11  ;;  %v2677_v11 = vld [vmem:[#allocation7 + $0x5e8] ss:$16 sps:$4 sm:$0xff]  }
  0xce   :  { %1355 = vmatpush1.bf16.msra.mxu0 %v2584_v10  ;;  %1478 = vmatpush1.bf16.msra.mxu1 %v2587_v12  ;;  %v2674_v10 = vld [vmem:[#allocation7 + $0x5e0] ss:$16 sps:$4 sm:$0xff]   ;;  %v90_v12 = vld [vmem:[#allocation3 + $0x20] sm:$0xff] }
  0xcf   :  { %1356 = vmatprep.subr.bf16.mxu0 %v2592_v13  ;;  %1479 = vmatprep.subr.bf16.mxu1 %v2595_v14  ;;  %v2295_v13 = vcombine.high %v1592_v9, %v1592_v9  ;;  %v2294_v14 = vcombine.low %v1592_v9, %v1592_v9  ;;  %v2765_v9 = vld [vmem:[#allocation8 + $0x1d4] ss:$8 sps:$4 sm:$0xff]  }
  0xd0   :  { %1386 = vmatprep.mubr.bf16.mxu0 %v97_v16  ;;  %1509 = vmatprep.mubr.bf16.mxu1 %v97_v16  ;;  %v96_v16 = vpack.c.bf16 %v90_v12, %v90_v12  ;;  %v2768_v12 = vld [vmem:[#allocation8 + $0xe4] ss:$8 sps:$4 sm:$0xff]  }
  0xd2   :  { %1357 = vmatpush1.bf16.msra.mxu0 %v2590_v17  ;;  %1480 = vmatpush1.bf16.msra.mxu1 %v2593_v18  ;;  %v1604_v17 = vsel %vm1602_vm0, %v2294_v14, 0  ;;  %v2682_v18 = vld [vmem:[#allocation8] ss:$8 sps:$4 sm:$0xff]  }
  0xd3   :  { %1358 = vmatprep.subr.bf16.mxu0 %v2598_v19  ;;  %1481 = vmatprep.subr.bf16.mxu1 %v2601_v20  ;;  %v2687_v19 = vld [vmem:[#allocation8 + $0x104] ss:$8 sps:$4 sm:$0xff]   ;;  %v2690_v20 = vld [vmem:[#allocation8 + $0x14] ss:$8 sps:$4 sm:$0xff]   ;;  %v2766_v14 = vld [vmem:[#allocation8 + $0xe0] ss:$8 sps:$4 sm:$0xff]  }
  0xd6   :  { %1359 = vmatpush1.bf16.msra.mxu0 %v2596_v21  ;;  %1482 = vmatpush1.bf16.msra.mxu1 %v2599_v22  ;;  %v2892_v21 = vmov 0   ;;  %v1590_v22 = vld [vmem:[#allocation5] sm:$0xff] }
  0xd7   :  { %1360 = vmatprep.subr.bf16.mxu0 %v2604_v23  ;;  %1483 = vmatprep.subr.bf16.mxu1 %v2607_v24  ;;  %v2688_v23 = vld [vmem:[#allocation8 + $0x10] ss:$8 sps:$4 sm:$0xff]   ;;  %v2696_v24 = vld [vmem:[#allocation8 + $0x24] ss:$8 sps:$4 sm:$0xff]  }
  0xda   :  { %1361 = vmatpush1.bf16.msra.mxu0 %v2602_v25  ;;  %1484 = vmatpush1.bf16.msra.mxu1 %v2605_v26  ;;  %v1591_v25 = vpack.c.bf16 %v1590_v22, %v1590_v22  ;;  %v2685_v26 = vld [vmem:[#allocation8 + $0x100] ss:$8 sps:$4 sm:$0xff]  }
  0xdb   :  { %1362 = vmatprep.subr.bf16.mxu0 %v2610_v27  ;;  %1485 = vmatprep.subr.bf16.mxu1 %v2613_v28  ;;  %v2693_v27 = vld [vmem:[#allocation8 + $0x114] ss:$8 sps:$4 sm:$0xff]   ;;  %v2694_v28 = vld [vmem:[#allocation8 + $0x20] ss:$8 sps:$4 sm:$0xff]  }
  0xde   :  { %1363 = vmatpush1.bf16.msra.mxu0 %v2608_v29  ;;  %1486 = vmatpush1.bf16.msra.mxu1 %v2611_v30  ;;  %v2702_v29 = vld [vmem:[#allocation8 + $0x34] ss:$8 sps:$4 sm:$0xff]   ;;  %v2691_v30 = vld [vmem:[#allocation8 + $0x110] ss:$8 sps:$4 sm:$0xff]  }
  0xdf   :  { %1364 = vmatprep.subr.bf16.mxu0 %v2616_v31  ;;  %1487 = vmatprep.subr.bf16.mxu1 %v2619_v32  ;;  %v2699_v31 = vld [vmem:[#allocation8 + $0x124] ss:$8 sps:$4 sm:$0xff]   ;;  %v2700_v32 = vld [vmem:[#allocation8 + $0x30] ss:$8 sps:$4 sm:$0xff]  }
  0xe2   :  { %1365 = vmatpush1.bf16.msra.mxu0 %v2614_v33  ;;  %1488 = vmatpush1.bf16.msra.mxu1 %v2617_v34  ;;  %v2708_v33 = vld [vmem:[#allocation8 + $0x44] ss:$8 sps:$4 sm:$0xff]   ;;  %v2697_v34 = vld [vmem:[#allocation8 + $0x120] ss:$8 sps:$4 sm:$0xff]  }
  0xe3   :  { %1366 = vmatprep.subr.bf16.mxu0 %v2622_v35  ;;  %1489 = vmatprep.subr.bf16.mxu1 %v2625_v36  ;;  %v2705_v35 = vld [vmem:[#allocation8 + $0x134] ss:$8 sps:$4 sm:$0xff]   ;;  %v2706_v36 = vld [vmem:[#allocation8 + $0x40] ss:$8 sps:$4 sm:$0xff]  }
  0xe6   :  { %1367 = vmatpush1.bf16.msra.mxu0 %v2620_v37  ;;  %1490 = vmatpush1.bf16.msra.mxu1 %v2623_v38  ;;  %v2714_v37 = vld [vmem:[#allocation8 + $0x54] ss:$8 sps:$4 sm:$0xff]   ;;  %v2703_v38 = vld [vmem:[#allocation8 + $0x130] ss:$8 sps:$4 sm:$0xff]  }
  0xe7   :  { %1368 = vmatprep.subr.bf16.mxu0 %v2628_v39  ;;  %1491 = vmatprep.subr.bf16.mxu1 %v2631_v40  ;;  %v2711_v39 = vld [vmem:[#allocation8 + $0x144] ss:$8 sps:$4 sm:$0xff]   ;;  %v2712_v40 = vld [vmem:[#allocation8 + $0x50] ss:$8 sps:$4 sm:$0xff]  }
  0xea   :  { %1369 = vmatpush1.bf16.msra.mxu0 %v2626_v41  ;;  %1492 = vmatpush1.bf16.msra.mxu1 %v2629_v42  ;;  %v2720_v41 = vld [vmem:[#allocation8 + $0x64] ss:$8 sps:$4 sm:$0xff]   ;;  %v2709_v42 = vld [vmem:[#allocation8 + $0x140] ss:$8 sps:$4 sm:$0xff]  }
  0xeb   :  { %1370 = vmatprep.subr.bf16.mxu0 %v2634_v43  ;;  %1493 = vmatprep.subr.bf16.mxu1 %v2637_v44  ;;  %v2717_v43 = vld [vmem:[#allocation8 + $0x154] ss:$8 sps:$4 sm:$0xff]   ;;  %v2718_v44 = vld [vmem:[#allocation8 + $0x60] ss:$8 sps:$4 sm:$0xff]  }
  0xee   :  { %1371 = vmatpush1.bf16.msra.mxu0 %v2632_v45  ;;  %1494 = vmatpush1.bf16.msra.mxu1 %v2635_v46  ;;  %v2726_v45 = vld [vmem:[#allocation8 + $0x74] ss:$8 sps:$4 sm:$0xff]   ;;  %v2715_v46 = vld [vmem:[#allocation8 + $0x150] ss:$8 sps:$4 sm:$0xff]  }
  0xef   :  { %1372 = vmatprep.subr.bf16.mxu0 %v2640_v47  ;;  %1495 = vmatprep.subr.bf16.mxu1 %v2643_v48  ;;  %v2723_v47 = vld [vmem:[#allocation8 + $0x164] ss:$8 sps:$4 sm:$0xff]   ;;  %v2724_v48 = vld [vmem:[#allocation8 + $0x70] ss:$8 sps:$4 sm:$0xff]  }
  0xf2   :  { %1373 = vmatpush1.bf16.msra.mxu0 %v2638_v49  ;;  %1496 = vmatpush1.bf16.msra.mxu1 %v2641_v50  ;;  %v2732_v49 = vld [vmem:[#allocation8 + $0x84] ss:$8 sps:$4 sm:$0xff]   ;;  %v2721_v50 = vld [vmem:[#allocation8 + $0x160] ss:$8 sps:$4 sm:$0xff]  }
  0xf3   :  { %1374 = vmatprep.subr.bf16.mxu0 %v2646_v51  ;;  %1497 = vmatprep.subr.bf16.mxu1 %v2649_v52  ;;  %v2729_v51 = vld [vmem:[#allocation8 + $0x174] ss:$8 sps:$4 sm:$0xff]   ;;  %v2730_v52 = vld [vmem:[#allocation8 + $0x80] ss:$8 sps:$4 sm:$0xff]  }
  0xf6   :  { %1375 = vmatpush1.bf16.msra.mxu0 %v2644_v53  ;;  %1498 = vmatpush1.bf16.msra.mxu1 %v2647_v54  ;;  %v2738_v53 = vld [vmem:[#allocation8 + $0x94] ss:$8 sps:$4 sm:$0xff]   ;;  %v2727_v54 = vld [vmem:[#allocation8 + $0x170] ss:$8 sps:$4 sm:$0xff]  }
  0xf7   :  { %1376 = vmatprep.subr.bf16.mxu0 %v2652_v55  ;;  %1499 = vmatprep.subr.bf16.mxu1 %v2655_v56  ;;  %v2735_v55 = vld [vmem:[#allocation8 + $0x184] ss:$8 sps:$4 sm:$0xff]   ;;  %v2736_v56 = vld [vmem:[#allocation8 + $0x90] ss:$8 sps:$4 sm:$0xff]  }
  0xfa   :  { %1377 = vmatpush1.bf16.msra.mxu0 %v2650_v57  ;;  %1500 = vmatpush1.bf16.msra.mxu1 %v2653_v58  ;;  %v2744_v57 = vld [vmem:[#allocation8 + $0xa4] ss:$8 sps:$4 sm:$0xff]   ;;  %v2733_v58 = vld [vmem:[#allocation8 + $0x180] ss:$8 sps:$4 sm:$0xff]  }
  0xfb   :  { %1378 = vmatprep.subr.bf16.mxu0 %v2658_v59  ;;  %1501 = vmatprep.subr.bf16.mxu1 %v2661_v60  ;;  %v2741_v59 = vld [vmem:[#allocation8 + $0x194] ss:$8 sps:$4 sm:$0xff]   ;;  %v2742_v60 = vld [vmem:[#allocation8 + $0xa0] ss:$8 sps:$4 sm:$0xff]  }
  0xfe   :  { %1379 = vmatpush1.bf16.msra.mxu0 %v2656_v61  ;;  %1502 = vmatpush1.bf16.msra.mxu1 %v2659_v62  ;;  %v2750_v61 = vld [vmem:[#allocation8 + $0xb4] ss:$8 sps:$4 sm:$0xff]   ;;  %v2739_v62 = vld [vmem:[#allocation8 + $0x190] ss:$8 sps:$4 sm:$0xff]  }
  0xff   :  { %1380 = vmatprep.subr.bf16.mxu0 %v2664_v63  ;;  %1503 = vmatprep.subr.bf16.mxu1 %v2667_v0  ;;  %v2747_v63 = vld [vmem:[#allocation8 + $0x1a4] ss:$8 sps:$4 sm:$0xff]   ;;  %v2748_v0 = vld [vmem:[#allocation8 + $0xb0] ss:$8 sps:$4 sm:$0xff]  }
 0x102   :  { %1381 = vmatpush1.bf16.msra.mxu0 %v2662_v1  ;;  %1504 = vmatpush1.bf16.msra.mxu1 %v2665_v2  ;;  %v2745_v1 = vld [vmem:[#allocation8 + $0x1a0] ss:$8 sps:$4 sm:$0xff]   ;;  %v2753_v2 = vld [vmem:[#allocation8 + $0x1b4] ss:$8 sps:$4 sm:$0xff]  }
 0x103   :  { %1382 = vmatprep.subr.bf16.mxu0 %v2670_v3  ;;  %1505 = vmatprep.subr.bf16.mxu1 %v2673_v4  ;;  %v2751_v3 = vld [vmem:[#allocation8 + $0x1b0] ss:$8 sps:$4 sm:$0xff]   ;;  %v2756_v4 = vld [vmem:[#allocation8 + $0xc4] ss:$8 sps:$4 sm:$0xff]  }
 0x106   :  { %1383 = vmatpush1.bf16.msra.mxu0 %v2668_v5  ;;  %1506 = vmatpush1.bf16.msra.mxu1 %v2671_v6  ;;  %v2759_v5 = vld [vmem:[#allocation8 + $0x1c4] ss:$8 sps:$4 sm:$0xff]   ;;  %v2754_v6 = vld [vmem:[#allocation8 + $0xc0] ss:$8 sps:$4 sm:$0xff]  }
 0x107   :  { %1384 = vmatprep.subr.bf16.mxu0 %v2676_v7  ;;  %1507 = vmatprep.subr.bf16.mxu1 %v2679_v8  ;;  %v2757_v7 = vld [vmem:[#allocation8 + $0x1c0] ss:$8 sps:$4 sm:$0xff]   ;;  %v2762_v8 = vld [vmem:[#allocation8 + $0xd4] ss:$8 sps:$4 sm:$0xff]  }
 0x10a   :  { %1385 = vmatpush1.bf16.msra.mxu0 %v2674_v10  ;;  %1508 = vmatpush1.bf16.msra.mxu1 %v2677_v11  ;;  %v2760_v10 = vld [vmem:[#allocation8 + $0xd0] ss:$8 sps:$4 sm:$0xff]  }
 0x10b   :  { %2296 = vmatprep.subr.msk.bf16.mxu0 %vm1602_vm0, %v2295_v13  ;;  %1970 = vmatprep.subr.bf16.mxu1 %v2684_v15  ;;  %v2763_v11 = vld [vmem:[#allocation8 + $0x1d0] ss:$8 sps:$4 sm:$0xff]   ;;  %v2771_v13 = vld [vmem:[#allocation8 + $0x1e4] ss:$8 sps:$4 sm:$0xff]   ;;  %v2769_v15 = vld [vmem:[#allocation8 + $0x1e0] ss:$8 sps:$4 sm:$0xff]  }
 0x10d   :  { %1387 = vmatmul.mubr.bf16.vlgmr.msra.gmra.mrb[0].mxu0 %v96_v16  ;;  %1510 = vmatmul.mubr.bf16.vlgmr.msra.gmra.mrb[0].mxu1 %v96_v16  ;;  %v2774_v16 = vld [vmem:[#allocation8 + $0xf4] ss:$8 sps:$4 sm:$0xff]  }
 0x10e   :  { %1610 = vmatpush1.bf16.msra.mxu0 %v1604_v17  ;;  %1641 = vmatprep.mubr.bf16.mxu0 %v2892_v21  ;;  %v2777_v17 = vld [vmem:[#allocation8 + $0x1f4] ss:$8 sps:$4 sm:$0xff]  }
 0x10f   :  { %2011 = vmatprep.subr.bf16.mxu0 %v2687_v19  ;;  %1971 = vmatpush1.bf16.msra.mxu1 %v2682_v18  ;;  %v2772_v18 = vld [vmem:[#allocation8 + $0xf0] ss:$8 sps:$4 sm:$0xff]  }
 0x110   :  { %1972 = vmatprep.subr.bf16.mxu1 %v2690_v20  ;;  %v2775_v19 = vld [vmem:[#allocation8 + $0x1f0] ss:$8 sps:$4 sm:$0xff]   ;;  %v292_v20 = vlaneseq }
 0x112   :  { %v293_v21 = vshrl.u32 %v292_v20, 7 }
 0x113   :  { %1973 = vmatpush1.bf16.msra.mxu1 %v2688_v23 }
 0x114   :  { %1974 = vmatprep.subr.bf16.mxu1 %v2696_v24  ;;  %v2997_v22 = vsub.s32 0, %v293_v21  ;;  %v302_v23 = vsub.s32 2, %v293_v21  ;;  %v290_v24 = vld [vmem:[%s3022_s3] sm:$0xf] }
 0x115   :  { %2297 = vmatmul.mubr.msk.bf16.vlgmr.msra.gmra.mrb[4].mxu0 %vm1598_vm1, %v1591_v25  ;;  %v3002_v25 = vsub.s32 1, %v293_v21 }
 0x116   :  { %2012 = vmatpush1.bf16.msra.mxu0 %v2685_v26  ;;  %v306_v26 = vsub.s32 3, %v293_v21 }
 0x117   :  { %2013 = vmatprep.subr.bf16.mxu0 %v2693_v27  ;;  %1975 = vmatpush1.bf16.msra.mxu1 %v2694_v28  ;;  %v295_v27 = vrot.slane %v290_v24, %v2997_v22  ;;  %v303_v28 = vrot.slane %v290_v24, %v302_v23 }
 0x118   :  { %1976 = vmatprep.subr.bf16.mxu1 %v2702_v29  ;;  %v299_v29 = vrot.slane %v290_v24, %v3002_v25 }
 0x11a   :  { %2014 = vmatpush1.bf16.msra.mxu0 %v2691_v30  ;;  %v307_v30 = vrot.slane %v290_v24, %v306_v26 }
 0x11b   :  { %2015 = vmatprep.subr.bf16.mxu0 %v2699_v31  ;;  %1977 = vmatpush1.bf16.msra.mxu1 %v2700_v32 }
 0x11c   :  { %1978 = vmatprep.subr.bf16.mxu1 %v2708_v33 }
 0x11e   :  { %2016 = vmatpush1.bf16.msra.mxu0 %v2697_v34 }
 0x11f   :  { %2017 = vmatprep.subr.bf16.mxu0 %v2705_v35  ;;  %1979 = vmatpush1.bf16.msra.mxu1 %v2706_v36 }
 0x120   :  { %1980 = vmatprep.subr.bf16.mxu1 %v2714_v37 }
 0x122   :  { %2018 = vmatpush1.bf16.msra.mxu0 %v2703_v38 }
 0x123   :  { %2019 = vmatprep.subr.bf16.mxu0 %v2711_v39  ;;  %1981 = vmatpush1.bf16.msra.mxu1 %v2712_v40 }
 0x124   :  { %1982 = vmatprep.subr.bf16.mxu1 %v2720_v41 }
 0x126   :  { %2020 = vmatpush1.bf16.msra.mxu0 %v2709_v42 }
 0x127   :  { %2021 = vmatprep.subr.bf16.mxu0 %v2717_v43  ;;  %1983 = vmatpush1.bf16.msra.mxu1 %v2718_v44 }
 0x128   :  { %1984 = vmatprep.subr.bf16.mxu1 %v2726_v45 }
 0x12a   :  { %2022 = vmatpush1.bf16.msra.mxu0 %v2715_v46 }
 0x12b   :  { %2023 = vmatprep.subr.bf16.mxu0 %v2723_v47  ;;  %1985 = vmatpush1.bf16.msra.mxu1 %v2724_v48 }
 0x12c   :  { %1986 = vmatprep.subr.bf16.mxu1 %v2732_v49 }
 0x12e   :  { %2024 = vmatpush1.bf16.msra.mxu0 %v2721_v50 }
 0x12f   :  { %2025 = vmatprep.subr.bf16.mxu0 %v2729_v51  ;;  %1987 = vmatpush1.bf16.msra.mxu1 %v2730_v52 }
 0x130   :  { %1988 = vmatprep.subr.bf16.mxu1 %v2738_v53 }
 0x132   :  { %2026 = vmatpush1.bf16.msra.mxu0 %v2727_v54 }
 0x133   :  { %2027 = vmatprep.subr.bf16.mxu0 %v2735_v55  ;;  %1989 = vmatpush1.bf16.msra.mxu1 %v2736_v56  ;;  %v2052_v55 = vld [vmem:[%s3025_s6] sm:$0x3] }
 0x134   :  { %1990 = vmatprep.subr.bf16.mxu1 %v2744_v57 }
 0x136   :  { %2028 = vmatpush1.bf16.msra.mxu0 %v2733_v58 }
 0x137   :  { %2029 = vmatprep.subr.bf16.mxu0 %v2741_v59  ;;  %1991 = vmatpush1.bf16.msra.mxu1 %v2742_v60  ;;  %v2057_v59 = vrot.slane %v2052_v55, %v2997_v22 }
 0x138   :  { %1992 = vmatprep.subr.bf16.mxu1 %v2750_v61 }
 0x13a   :  { %2030 = vmatpush1.bf16.msra.mxu0 %v2739_v62 }
 0x13b   :  { %2031 = vmatprep.subr.bf16.mxu0 %v2747_v63  ;;  %1993 = vmatpush1.bf16.msra.mxu1 %v2748_v0  ;;  %v2061_v63 = vrot.slane %v2052_v55, %v3002_v25 }
 0x13c   :  { %1994 = vmatprep.subr.bf16.mxu1 %v2756_v4 }
 0x13e   :  { %2032 = vmatpush1.bf16.msra.mxu0 %v2745_v1 }
 0x13f   :  { %2033 = vmatprep.subr.bf16.mxu0 %v2753_v2  ;;  %1995 = vmatpush1.bf16.msra.mxu1 %v2754_v6 }
 0x140   :  { %1996 = vmatprep.subr.bf16.mxu1 %v2762_v8  ;;  %v2068_v8 = vld [vmem:[%s3026_s7] sm:$0x3] }
 0x142   :  { %2034 = vmatpush1.bf16.msra.mxu0 %v2751_v3 }
 0x143   :  { %2035 = vmatprep.subr.bf16.mxu0 %v2759_v5  ;;  %1997 = vmatpush1.bf16.msra.mxu1 %v2760_v10  ;;  %v2077_v10 = vrot.slane %v2068_v8, %v3002_v25 }
 0x144   :  { %1998 = vmatprep.subr.bf16.mxu1 %v2768_v12 }
 0x146   :  { %2036 = vmatpush1.bf16.msra.mxu0 %v2757_v7 }
 0x147   :  { %2037 = vmatprep.subr.bf16.mxu0 %v2765_v9  ;;  %1999 = vmatpush1.bf16.msra.mxu1 %v2766_v14  ;;  %v2073_v9 = vrot.slane %v2068_v8, %v2997_v22 }
 0x148   :  { %2000 = vmatprep.subr.bf16.mxu1 %v2774_v16  ;;  %v2362_v16 = vld [vmem:[#allocation2] ss:$0 sm:$0xff] }
 0x14a   :  { %2038 = vmatpush1.bf16.msra.mxu0 %v2763_v11 }
 0x14b   :  { %2039 = vmatprep.subr.bf16.mxu0 %v2771_v13  ;;  %2001 = vmatpush1.bf16.msra.mxu1 %v2772_v18 }
 0x14e   :  { %2040 = vmatpush1.bf16.msra.mxu0 %v2769_v15 }
 0x14f   :  { %2041 = vmatprep.subr.bf16.mxu0 %v2777_v17 }
 0x152   :  { %2042 = vmatpush1.bf16.msra.mxu0 %v2775_v19 }
 0x1e0   :  { %v1388_v31 = vpop.f32.mrb[0].mxu0  ;;  %v1511_v32 = vpop.f32.mrb[0].mxu1 }
 0x1e1   :  { %v2363_v33 = vadd.f32 %v1388_v31, %v295_v27  ;;  %v2365_v34 = vadd.f32 %v1511_v32, %v303_v28  ;;  %v1390_v35 = vpop.f32.mrb[1].mxu0  ;;  %v1513_v36 = vpop.f32.mrb[1].mxu1 }
 0x1e2   :  { %v2364_v37 = vadd.f32 %v1390_v35, %v299_v29  ;;  %v2366_v38 = vadd.f32 %v1513_v36, %v307_v30  ;;  %v1392_v39 = vpop.f32.mrb[2].mxu0  ;;  %v1515_v40 = vpop.f32.mrb[2].mxu1 }
 0x1e3   :  { %2778 = vtanh.f32 %v2363_v33  ;;  %v1393_v41 = vpop.f32.mrb[3].mxu0  ;;  %v1516_v42 = vpop.f32.mrb[3].mxu1 }
 0x1e4   :  { %2780 = vtanh.f32 %v2365_v34 }
 0x1e5   :  { %2782 = vtanh.f32 %v2364_v37 }
 0x1e6   :  { %2784 = vtanh.f32 %v2366_v38 }
 0x1e8   :  { %v1643_v43 = vpop.f32.mrb[4].mxu0 }
 0x1e9   :  { %v1645_v44 = vpop.f32.mrb[5].mxu0 }
 0x1ea   :  { %v1647_v45 = vpop.f32.mrb[6].mxu0 }
 0x1eb   :  { %v1648_v46 = vpop.f32.mrb[7].mxu0 }
 0x1ed   :  { %v2779_v47 = vpop.eup %2778 }
 0x1ee   :  { %v2781_v48 = vpop.eup %2780  ;;  %v1522_v52 = vpack.c.bf16 %v2779_v47, %v2779_v47 }
 0x1ef   :  { %v2783_v49 = vpop.eup %2782  ;;  %v1524_v54 = vpack.c.bf16 %v2781_v48, %v2781_v48 }
 0x1f0   :  { %v2785_v50 = vpop.eup %2784  ;;  %v1523_v51 = vpack.c.bf16 %v2783_v49, %v2783_v49 }
 0x1f1   :  { %v1525_v53 = vpack.c.bf16 %v2785_v50, %v2785_v50 }
 0x1f2   :  { %2002 = vmatprep.mubr.bf16.mxu1 %v1523_v51 }
 0x1f3   :  { %2043 = vmatprep.mubr.bf16.mxu0 %v1525_v53  ;;  %2003 = vmatmul.mubr.bf16.vlgmr.msra.gmra.mrb[4].mxu1 %v1522_v52 }
 0x1f4   :  { %2044 = vmatmul.mubr.bf16.vlgmr.msra.gmra.mrb[8].mxu0 %v1524_v54 }
 0x2c6   :  { %v2004_v56 = vpop.f32.mrb[4].mxu1 }
 0x2c7   :  { %v2005_v57 = vadd.f32 %v2004_v56, %v1643_v43  ;;  %v2045_v58 = vpop.f32.mrb[8].mxu0  ;;  %v2006_v60 = vpop.f32.mrb[5].mxu1 }
 0x2c8   :  { %v2007_v61 = vadd.f32 %v2006_v60, %v1645_v44  ;;  %v2047_v62 = vpop.f32.mrb[9].mxu0  ;;  %v2008_v0 = vpop.f32.mrb[6].mxu1 }
 0x2c9   :  { %v2046_v1 = vadd.f32 %v2045_v58, %v2005_v57  ;;  %v2049_v2 = vpop.f32.mrb[10].mxu0  ;;  %v2009_v3 = vpop.f32.mrb[7].mxu1 }
 0x2ca   :  { %v2048_v4 = vadd.f32 %v2047_v62, %v2007_v61  ;;  %v2050_v5 = vpop.f32.mrb[11].mxu0 }
 0x2cb   :  { %v2064_v6 = vadd.f32 %v2057_v59, %v2046_v1 }
 0x2cc   :  { %v2065_v7 = vadd.f32 %v2061_v63, %v2048_v4 }
 0x2cd   :  { %2786 = vtanh.f32 %v2064_v6 }
 0x2ce   :  { %2788 = vtanh.f32 %v2065_v7 }
 0x2d7   :  { %v2787_v11 = vpop.eup %2786 }
 0x2d8   :  { %v2789_v12 = vpop.eup %2788  ;;  %v2080_v13 = vmul.f32 %v2787_v11, %v2073_v9 }
 0x2d9   :  { %v2081_v14 = vmul.f32 %v2789_v12, %v2077_v10 }
 0x2db   :  { %v2082_v15 = vadd.f32 %v2081_v14, %v2080_v13 }
 0x2dd   :  { %2083 = vadd.xlane.f32.xlu0 %v2082_v15 }
 0x36a   :  { %v2084_v17 = vpop.xlane.xlu0 %2083 }
 0x36b   :  { %v2092_v18 = vadd.f32 %v2362_v16, %v2084_v17 }
 0x36d   :  { %2094 = vst.msk [vmem:[%s3028_s9] sm:$0xff] %vm2093_vm2, %v2092_v18 }
 0x36e   :  { %2099 = vsyncpa [#allocation4], 1 }
 0x36f   :  { %2100 = vsyncpa [#allocation6], 1 }
 0x370   :  { %2101 = vsyncpa [#allocation9], 1 }

</bundles_post_ra>
